<compile_context>
chip_gen: v6e
topology: v6e:2x2x1
jax: 0.10.0
libtpu: 0.0.40
codegen_flags: <defaults>
</compile_context>

<pallas_src>
import math
import jax
import jax.numpy as jnp
from jax.experimental import pallas as pl
from jax.experimental.pallas import tpu as pltpu

_LANE = 128
_MAX_TILE_N = 4096   # 4096 lanes * 32 sublanes * 4B = 512 KiB per output tile


def _round_up(x, m):
    return -(-x // m) * m


def _pick_tile(npoints):
    """Pick a lane-aligned tile size <= _MAX_TILE_N that minimizes pad waste."""
    n_lane = _round_up(npoints, _LANE)
    if n_lane <= _MAX_TILE_N:
        return n_lane
    num_tiles = pl.cdiv(npoints, _MAX_TILE_N)
    return _round_up(pl.cdiv(npoints, num_tiles), _LANE)


def _fourier_embed_kernel(bT_ref, x_ref, o_ref):
    # bT_ref: (d_out, d_in) f32     -- Gaussian projection matrix, pre-transposed
    # x_ref : (1, d_in, TILE_N)     -- coords tile (channels on sublanes, points on lanes)
    # o_ref : (1, 2*d_out, TILE_N)  -- output tile already in PyTorch (B, C, N) layout
    bT = bT_ref[...]                                   # (d_out, d_in)
    d_out, d_in = bT.shape
    x = x_ref[0].astype(jnp.float32)                   # (d_in, TILE_N), cast in-kernel

    # K = d_in (3) is tiny: unrolled VPU broadcast multiply-adds (exact f32),
    # avoids an MXU matmul at ~2% utilization.
    proj = bT[:, 0:1] * x[0:1, :]                      # (d_out, TILE_N)
    for k in range(1, d_in):
        proj = proj + bT[:, k:k + 1] * x[k:k + 1, :]

    # Direct sub-slice stores (no concatenate temp); N on lanes -> unmasked vst.
    o_ref[0, :d_out, :] = jnp.sin(proj).astype(o_ref.dtype)
    o_ref[0, d_out:, :] = jnp.cos(proj).astype(o_ref.dtype)


class PositionEmbeddingCoordsSinePallas:
    """JAX/Pallas port of PositionEmbeddingCoordsSine (fourier path)."""

    def __init__(self, temperature=10000, normalize=False, scale=None,
                 pos_type="fourier", d_pos=None, d_in=3, gauss_scale=1.0,
                 key=None):
        if scale is not None and not normalize:
            raise ValueError("normalize should be True if scale is passed")
        if scale is None:
            scale = 2 * math.pi
        assert pos_type in ("sine", "fourier")
        self.temperature = temperature
        self.normalize = normalize
        self.scale = scale
        self.pos_type = pos_type
        if pos_type == "fourier":
            assert d_pos is not None and d_pos % 2 == 0
            if key is None:
                key = jax.random.PRNGKey(0)
            # deterministic synthetic init of the Gaussian buffer, matching
            # torch.empty((d_in, d_pos//2)).normal_() * gauss_scale in shape/dist.
            self.gauss_B = (jax.random.normal(key, (d_in, d_pos // 2),
                                              dtype=jnp.float32) * gauss_scale)
            self.d_pos = d_pos
        # TODO(synk): sine path and normalize=True (shift_scale_points) are not
        # exercised by the default config and are not implemented here.

    def __call__(self, xyz, num_channels=None, input_range=None):
        assert self.pos_type == "fourier"
        if num_channels is None:
            num_channels = self.gauss_B.shape[1] * 2
        bsize, npoints, d_in = xyz.shape
        d_out = num_channels // 2
        assert 0 < d_out <= self.gauss_B.shape[1]
        assert d_in == self.gauss_B.shape[0]
        assert not self.normalize  # TODO(synk): normalization not implemented

        gBT = jnp.transpose(self.gauss_B[:, :d_out])           # (d_out, d_in) f32

        # Fuse the output permute: channels -> sublanes, points -> lanes.
        # The input is tiny (B*N*d_in), so this transpose/pad is negligible.
        x_t = jnp.transpose(xyz, (0, 2, 1))                     # (B, d_in, N)

        tile_n = _pick_tile(npoints)
        n_tiles = pl.cdiv(npoints, tile_n)
        n_pad = n_tiles * tile_n
        if n_pad != npoints:
            x_t = jnp.pad(x_t, ((0, 0), (0, 0), (0, n_pad - npoints)))

        grid = (bsize, n_tiles)

        out = pl.pallas_call(
            _fourier_embed_kernel,
            out_shape=jax.ShapeDtypeStruct((bsize, 2 * d_out, n_pad), xyz.dtype),
            grid_spec=pltpu.PrefetchScalarGridSpec(
                num_scalar_prefetch=0,
                grid=grid,
                in_specs=[
                    # constant block across the grid -> trivial, re-DMA'd cheaply
                    pl.BlockSpec((d_out, d_in), lambda b, t: (0, 0)),
                    pl.BlockSpec((1, d_in, tile_n), lambda b, t: (b, 0, t)),
                ],
                out_specs=pl.BlockSpec((1, 2 * d_out, tile_n),
                                       lambda b, t: (b, 0, t)),
            ),
            compiler_params=pltpu.CompilerParams(
                # both axes independent -> shard across v7x's 2 TensorCores
                dimension_semantics=("parallel", "parallel"),
                # explicit, modest limit: tiles are <1 MiB, far under any chip's VMEM
                vmem_limit_bytes=32 * 1024 * 1024,
            ),
        )(gBT, x_t)

        if n_pad != npoints:
            out = out[:, :, :npoints]
        return out                                              # (B, 2*d_out, N)


def _reference(xyz, gauss_B, d_out):
    proj = jnp.einsum("bnd,dk->bnk", xyz, gauss_B[:, :d_out],
                      precision=jax.lax.Precision.HIGHEST)
    return jnp.transpose(
        jnp.concatenate((jnp.sin(proj), jnp.cos(proj)), axis=2), (0, 2, 1))


if __name__ == "__main__":
    B, N, D_IN, D_POS = 2, 256, 3, 32

    key = jax.random.PRNGKey(0)
    k_buf, k_xyz, k_xyz2 = jax.random.split(key, 3)

    mod = PositionEmbeddingCoordsSinePallas(pos_type="fourier", d_pos=D_POS,
                                            d_in=D_IN, gauss_scale=1.0,
                                            key=k_buf)

    # main case: N a multiple of 128
    xyz = jax.random.uniform(k_xyz, (B, N, D_IN), dtype=jnp.float32)
    out = jax.block_until_ready(mod(xyz))                       # (B, D_POS, N)
    ref = _reference(xyz, mod.gauss_B, D_POS // 2)
    assert out.shape == (B, D_POS, N)
    assert jnp.allclose(out, ref, atol=1e-5, rtol=1e-5)

    # ragged case: N not a multiple of 128 (exercises the pad + slice path)
    N2 = 200
    xyz2 = jax.random.uniform(k_xyz2, (1, N2, D_IN), dtype=jnp.float32)
    out2 = jax.block_until_ready(mod(xyz2))                     # (1, D_POS, N2)
    ref2 = _reference(xyz2, mod.gauss_B, D_POS // 2)
    assert out2.shape == (1, D_POS, N2)
    assert jnp.allclose(out2, ref2, atol=1e-5, rtol=1e-5)

    print("KERNEL_OK")
</pallas_src>

<mosaic_0001>
module attributes {stable_mosaic.version = 11 : i64} {
  func.func @_fourier_embed_kernel(%arg0: i32, %arg1: i32, %arg2: memref<16x3xf32, #tpu.memory_space<vmem>>, %arg3: memref<1x3x256xf32, #tpu.memory_space<vmem>>, %arg4: memref<1x32x256xf32, #tpu.memory_space<vmem>>) attributes {dimension_semantics = [#tpu.dimension_semantics<parallel>, #tpu.dimension_semantics<parallel>], iteration_bounds = array<i64: 2, 1>, scalar_prefetch = 0 : i64, scratch_operands = 0 : i64, tpu.core_type = #tpu.core_type<tc>, window_params = [{pipeline_mode = #tpu.pipeline_mode<synchronous>, transform_indices = @transform_0, window_bounds = array<i64: 16, 3>}, {transform_indices = @transform_1, window_bounds = array<i64: 1, 3, 256>}, {transform_indices = @transform_2, window_bounds = array<i64: 1, 32, 256>}]} {
    %c0 = arith.constant 0 : index
    %c0_0 = arith.constant 0 : index
    %0 = vector.load %arg2[%c0, %c0_0] : memref<16x3xf32, #tpu.memory_space<vmem>>, vector<16x3xf32>
    %c0_1 = arith.constant 0 : index
    %c0_2 = arith.constant 0 : index
    %c0_3 = arith.constant 0 : index
    %1 = vector.load %arg3[%c0_1, %c0_2, %c0_3] : memref<1x3x256xf32, #tpu.memory_space<vmem>>, vector<1x3x256xf32>
    %2 = vector.shape_cast %1 : vector<1x3x256xf32> to vector<3x256xf32>
    %3 = vector.extract_strided_slice %0 {offsets = [0, 0], sizes = [16, 1], strides = [1, 1]} : vector<16x3xf32> to vector<16x1xf32>
    %4 = vector.extract_strided_slice %2 {offsets = [0, 0], sizes = [1, 256], strides = [1, 1]} : vector<3x256xf32> to vector<1x256xf32>
    %5 = vector.broadcast %3 : vector<16x1xf32> to vector<16x256xf32>
    %6 = vector.broadcast %4 : vector<1x256xf32> to vector<16x256xf32>
    %7 = arith.mulf %5, %6 : vector<16x256xf32>
    %8 = vector.extract_strided_slice %0 {offsets = [0, 1], sizes = [16, 1], strides = [1, 1]} : vector<16x3xf32> to vector<16x1xf32>
    %9 = vector.extract_strided_slice %2 {offsets = [1, 0], sizes = [1, 256], strides = [1, 1]} : vector<3x256xf32> to vector<1x256xf32>
    %10 = vector.broadcast %8 : vector<16x1xf32> to vector<16x256xf32>
    %11 = vector.broadcast %9 : vector<1x256xf32> to vector<16x256xf32>
    %12 = arith.mulf %10, %11 : vector<16x256xf32>
    %13 = arith.addf %7, %12 : vector<16x256xf32>
    %14 = vector.extract_strided_slice %0 {offsets = [0, 2], sizes = [16, 1], strides = [1, 1]} : vector<16x3xf32> to vector<16x1xf32>
    %15 = vector.extract_strided_slice %2 {offsets = [2, 0], sizes = [1, 256], strides = [1, 1]} : vector<3x256xf32> to vector<1x256xf32>
    %16 = vector.broadcast %14 : vector<16x1xf32> to vector<16x256xf32>
    %17 = vector.broadcast %15 : vector<1x256xf32> to vector<16x256xf32>
    %18 = arith.mulf %16, %17 : vector<16x256xf32>
    %19 = arith.addf %13, %18 : vector<16x256xf32>
    %20 = math.sin %19 : vector<16x256xf32>
    %c0_4 = arith.constant 0 : index
    %c0_5 = arith.constant 0 : index
    %c0_6 = arith.constant 0 : index
    %21 = vector.load %arg4[%c0_4, %c0_5, %c0_6] : memref<1x32x256xf32, #tpu.memory_space<vmem>>, vector<1x16x256xf32>
    %22 = vector.shape_cast %21 : vector<1x16x256xf32> to vector<16x256xf32>
    %23 = vector.shape_cast %20 : vector<16x256xf32> to vector<1x16x256xf32>
    tpu.vector_store %arg4[%c0_4, %c0_5, %c0_6], %23 {strides = array<i32>} : memref<1x32x256xf32, #tpu.memory_space<vmem>>, vector<1x16x256xf32>,
    %24 = math.cos %19 : vector<16x256xf32>
    %c0_7 = arith.constant 0 : index
    %c16 = arith.constant 16 : index
    %c0_8 = arith.constant 0 : index
    %25 = vector.load %arg4[%c0_7, %c16, %c0_8] : memref<1x32x256xf32, #tpu.memory_space<vmem>>, vector<1x16x256xf32>
    %26 = vector.shape_cast %25 : vector<1x16x256xf32> to vector<16x256xf32>
    %27 = vector.shape_cast %24 : vector<16x256xf32> to vector<1x16x256xf32>
    tpu.vector_store %arg4[%c0_7, %c16, %c0_8], %27 {strides = array<i32>} : memref<1x32x256xf32, #tpu.memory_space<vmem>>, vector<1x16x256xf32>,
    return
  }
  func.func @transform_0(%arg0: i32, %arg1: i32) -> (i32, i32) {
    %c0_i32 = arith.constant 0 : i32
    %c0_i32_0 = arith.constant 0 : i32
    %c0_i32_1 = arith.constant 0 : i32
    return %c0_i32, %c0_i32_0 : i32, i32
  }
  func.func @transform_1(%arg0: i32, %arg1: i32) -> (i32, i32, i32) {
    %c0_i32 = arith.constant 0 : i32
    %c0_i32_0 = arith.constant 0 : i32
    return %arg0, %c0_i32, %arg1 : i32, i32, i32
  }
  func.func @transform_2(%arg0: i32, %arg1: i32) -> (i32, i32, i32) {
    %c0_i32 = arith.constant 0 : i32
    %c0_i32_0 = arith.constant 0 : i32
    return %arg0, %c0_i32, %arg1 : i32, i32, i32
  }
}

</mosaic_0001>

<bundles_post_ra>
// kernel: tpu_custom_call.1
= control target key start
LH: loop header
LB: loop body
LE: loop exit
PB: predicated region body
PF: predicated region fallthrough
CT: control target
= control target key end

     0   :  { %7 = vsyncpa [#allocation3], 0  ;;  %s1911_s0 = inlined_call_operand.vmem [shape: f32[16,3], index: 0, kind: input, shape index: {}]   ;;  %s1912_s1 = inlined_call_operand.vmem [shape: f32[2,3,256], index: 1, kind: input, shape index: {}]   ;;  %s1913_s2 = inlined_call_operand.hbm [shape: f32[2,32,256], index: 2, kind: output, shape index: {}]  }
   0x1   :  { %9 = vsyncpa [#allocation3 + $0x1], 0  ;;  %s1462_s9 = smov 0   ;;  %s1464_s10 = smov 0  }
   0x2   :  { %s1466_s11 = smov 0   ;;  %s1468_s12 = smov 0  }
   0x3   :  { %s1470_s13 = smov 0   ;;  %s1472_s14 = smov 0  }
   0x4 LB: > { %s1208_s15 = sadd.s32 4294967295, %s1433_s14   ;;  %s1209_s16 = sadd.s32 4294967294, %s1433_s14   ;;  %s1433_s14 = sphi %s1472_s14, %s15_s14   ;;  %s1429_s13 = sphi %s1470_s13, %s1924_s13   ;;  %s1425_s12 = sphi %s1468_s12, %s1923_s12   ;;  %s1421_s11 = sphi %s1466_s11, %s1922_s11   ;;  %s1417_s10 = sphi %s1464_s10, %s1921_s10   ;;  %s1413_s9 = sphi %s1462_s9, %s1920_s9  }
   0x5   : > { %s27_s17 = sadd.s32 1, %s1429_s13  ;;  %s85_s18 = sadd.s32 1, %s1421_s11 }
   0x6   : > { %p29_p0 = scmp.ge.s32.totalorder %s27_s17, 2  ;;  %p95_p1 = scmp.ne.s32.totalorder %s1421_s11, %s1417_s10 }
   0x7   : > { %p96_p2 = scmp.eq.s32.totalorder %s1208_s15, 1  ;;  %p101_p3 = scmp.ne.s32.totalorder %s1417_s10, %s1413_s9 }
   0x8   : > { %s1926_s17 = smov (%p29_p0, %s27_s17), 0  ;;  %p102_p5 = scmp.eq.s32.totalorder %s1209_s16, 1 }
   0x9   : > { %p1502_p4 = por %p96_p2, %p95_p1  ;;  %s80_s20 = ssub.s32 %s1429_s13, %s1926_s17 }
   0xa   : > { %p1212_p6 = scmp.ge.s32.totalorder %s1433_s14, 1  ;;  %p83_p7 = scmp.eq.s32.totalorder %s80_s20, 0 }
   0xb   : > { %p1509_p8 = por %p102_p5, %p101_p3  ;;  %p136_p9 = scmp.lt.s32.totalorder %s1433_s14, 3 }
   0xc   : > { %s1515_s22 = scalar_select %p83_p7, %s1421_s11, %s85_s18  }
   0xd   : > { %p137_p10 = pnand %p1212_p6, %p136_p9 }
   0xe   : > { %p163_p11 = scmp.lt.s32.totalorder (!%p137_p10), %s1425_s12, 1  ;;  %s159_s4 = sand.u32 (!%p137_p10), 1, %s1417_s10  }
   0xf   : > { %140 = sbr.rel (%p137_p10) target bundleno = 313 (0x139), region = 28  ;;  %s1213_s5 = sshll.u32 (!%p137_p10), %s159_s4, 6 }
  0x10   : > { %s1815_s6 = scalar_lea.vmem (!%p137_p10), [#allocation2], %s1213_s5  ;;  %s1254_s7 = sshll.u32 (!%p137_p10), %s1425_s12, 10 }
  0x11   : > { %s1129_s8 = sshll.u32 (!%p137_p10), %s1815_s6, 4  ;;  %s1866_s18 = scalar_lea.sflag (!%p137_p10), [#allocation3], %s159_s4  ;;  %s1859_s8 = int_to_ptr.vmem [resolvable:$true] %s1129_s8 }
  0x12   : > { %s1357_s20 = scalar_lea.vmem (!%p137_p10), %s1859_s8, 1024  ;;  %s1444_s23 = smov (!%p137_p10), [#allocation2]  }
  0x13   : > { %p1358_p12 = scmp.ne.s32.totalorder (!%p137_p10), %s1859_s8, %s1357_s20  ;;  %s1361_s24 = sshll.u32 (!%p137_p10), %s1444_s23, 4  ;;  %s1362_s24 = int_to_ptr.vmem [resolvable:$false] %s1361_s24 }
  0x14   : > { %v173_v0 = vld [vmem:[%s1911_s0] sm:$0xff]  ;;  %v1435_v1 = vmov 1   ;;  %v1436_v2 = vmov 0   ;;  %v174_v3 = vld [vmem:[%s1911_s0 + $0x8] sm:$0xff]  ;;  %v1437_v4 = vmov 2   ;;  %s164_s27 = scalar_select %p163_p11, %s1425_s12, 1  ;;  %v187_v5 = vlaneseq }
  0x15   : > { %1338 = vset.pattern.permute.xlu1 %v1435_v1  ;;  %1337 = vset.pattern.permute.xlu0 %v1436_v2  ;;  %s1857_s12 = scalar_lea.hbm %s1913_s2, %s1254_s7  ;;  %p1359_p13 = pnand %p1358_p12, %p1502_p4 }
  0x16   : > { %210 = vperm.xlu1 %1338, %v173_v0   ;;  %178 = vperm.xlu0 %1337, %v173_v0   ;;  %s1253_s28 = sshll.u32 %s164_s27, 3  ;;  %v188_v6 = vshrl.u32 %v187_v5, 7  ;;  %s1363_s25 = scalar_lea.vmem %s1362_s24, 2048 }
  0x17   : > { %s170_s3 = scalar_lea.vmem %s1912_s1, %s1253_s28  ;;  %p1360_p0 = pneg %p1359_p13 }
  0x18   : > { %v219_v7 = vsub.s32 1, %v188_v6  ;;  %v189_v8 = vsub.s32 0, %v188_v6  ;;  %v223_v9 = vsub.s32 5, %v188_v6  ;;  %v175_v10 = vld [vmem:[%s170_s3] sm:$0x77]  ;;  %v193_v11 = vsub.s32 4, %v188_v6  ;;  %p1364_p1 = scmp.lt.s32.totalorder %s1859_s8, %s1362_s24  ;;  %p1365_p2 = scmp.lt.s32.totalorder %s1363_s25, %s1357_s20 }
  0x19   : > { %v253_v12 = vsub.s32 2, %v188_v6  ;;  %v257_v13 = vsub.s32 6, %v188_v6 }
  0x1a   : > { %214 = vperm.xlu1 %1338, %v174_v3   ;;  %183 = vperm.xlu0 %1337, %v174_v3   ;;  %v220_v14 = vrot.slane %v175_v10, %v219_v7  ;;  %v190_v15 = vrot.slane %v175_v10, %v189_v8  ;;  %v224_v17 = vrot.slane %v175_v10, %v223_v9  ;;  %p1366_p3 = por %p1365_p2, %p1364_p1 }
  0x1b   : > { %v194_v19 = vrot.slane %v175_v10, %v193_v11  ;;  %v254_v20 = vrot.slane %v175_v10, %v253_v12  ;;  %v258_v21 = vrot.slane %v175_v10, %v257_v13 }
  0x1c   : > { %v230_v22 = vrot.slane %v220_v14, %v219_v7  ;;  %v200_v23 = vrot.slane %v190_v15, %v189_v8  ;;  %v234_v24 = vrot.slane %v224_v17, %v219_v7  ;;  %v1438_v14 = vmov 683565275   ;;  %p1367_p5 = pnand %p1366_p3, %p1360_p0 }
  0x1d   : > { %v204_v25 = vrot.slane %v194_v19, %v189_v8  ;;  %v264_v32 = vrot.slane %v254_v20, %v253_v12  ;;  %v268_v33 = vrot.slane %v258_v21, %v253_v12  ;;  %v1440_v20 = vmov 2131351028  }
  0x1e   : > { %1340 = vset.pattern.permute.xlu1 %v1437_v4  ;;  %1339 = vset.pattern.permute.xlu0 %v1437_v4 }
  0x1f   : > { %248 = vperm.xlu1 %1340, %v174_v3   ;;  %244 = vperm.xlu0 %1339, %v173_v0  }
  0x91   : > { %v211_v16 = vpop.permute.xlu1 %210  ;;  %v179_v18 = vpop.permute.xlu0 %178 }
  0x92   : > { %v235_v34 = vmul.f32 %v230_v22, %v211_v16  ;;  %v205_v35 = vmul.f32 %v200_v23, %v179_v18  ;;  %v236_v56 = vmul.f32 %v234_v24, %v211_v16  ;;  %v206_v57 = vmul.f32 %v204_v25, %v179_v18 }
  0x93   : > { %v1439_v18 = vmov 2475754826  }
  0x94   : > { %v239_v43 = vadd.f32 %v235_v34, %v205_v35  ;;  %v240_v3 = vadd.f32 %v236_v56, %v206_v57 }
  0x95   : > { %v215_v26 = vpop.permute.xlu1 %214  ;;  %v184_v27 = vpop.permute.xlu0 %183 }
  0x96   : > { %v237_v28 = vmul.f32 %v230_v22, %v215_v26  ;;  %v207_v29 = vmul.f32 %v200_v23, %v184_v27  ;;  %v238_v30 = vmul.f32 %v234_v24, %v215_v26  ;;  %v208_v31 = vmul.f32 %v204_v25, %v184_v27 }
  0x97   : > { %v1441_v22 = vmov 2102212464   ;;  %v1442_v24 = vmov 920167782  }
  0x98   : > { %v241_v36 = vadd.f32 %v237_v28, %v207_v29  ;;  %v242_v39 = vadd.f32 %v238_v30, %v208_v31  ;;  %v1443_v31 = vmov 1326507024  }
  0x9a   : > { %v249_v37 = vpop.permute.xlu1 %248  ;;  %v245_v38 = vpop.permute.xlu0 %244 }
  0x9b   : > { %v271_v40 = vmul.f32 %v264_v32, %v249_v37  ;;  %v272_v41 = vmul.f32 %v268_v33, %v249_v37  ;;  %v269_v42 = vmul.f32 %v264_v32, %v245_v38  ;;  %v270_v62 = vmul.f32 %v268_v33, %v245_v38 }
  0x9d   : > { %v1528_v44 = vadd.f32 %v271_v40, %v241_v36  ;;  %v1530_v45 = vadd.f32 %v272_v41, %v242_v39  ;;  %v1532_v46 = vadd.f32 %v269_v42, %v239_v43  ;;  %v1543_v8 = vadd.f32 %v270_v62, %v240_v3 }
  0x9f   : > { %v485_v47 = vand.u32 2147483647, %v1528_v44  ;;  %v488_v48 = vand.u32 2139095040, %v1528_v44  ;;  %v589_v49 = vand.u32 2147483647, %v1530_v45  ;;  %v592_v50 = vand.u32 2139095040, %v1530_v45 }
  0xa0   : > { %v280_v55 = vand.u32 2139095040, %v1532_v46  ;;  %v277_v11 = vand.u32 2147483647, %v1532_v46  ;;  %vm487_vm13 = vcmp.lt.s32.totalorder %v1528_v44, 0 }
  0xa1   : > { %v489_v51 = vshrl.u32 %v488_v48, 23  ;;  %v492_v52 = vand.u32 8388607, %v485_v47  ;;  %v593_v53 = vshrl.u32 %v592_v50, 23  ;;  %v596_v54 = vand.u32 8388607, %v589_v49 }
  0xa2   : > { %v281_v60 = vshrl.u32 %v280_v55, 23  ;;  %vm1640_vm14 = vcmp.le.f32.partialorder %v485_v47, 0.7853982 }
  0xa3   : > { %v1224_v58 = vadd.s32 4294967169, %v489_v51  ;;  %v1228_v59 = vadd.s32 4294967169, %v593_v53  ;;  %v493_v63 = vor.u32 8388608, %v492_v52  ;;  %v597_v0 = vor.u32 8388608, %v596_v54 }
  0xa4   : > { %v1216_v2 = vadd.s32 4294967169, %v281_v60 }
  0xa5   : > { %v495_v61 = vadd.s32 1, %v1224_v58  ;;  %v599_v1 = vadd.s32 1, %v1228_v59  ;;  %v1545_v9 = vshll.u32 %v493_v63, 8  ;;  %v1547_v10 = vshll.u32 %v597_v0, 8 }
  0xa6   : > { %v1550_v12 = vadd.s32 1, %v1216_v2 }
  0xa7   : > { %vm496_vm0 = vcmp.gt.s32.totalorder %v495_v61, 0  ;;  %vm600_vm1 = vcmp.gt.s32.totalorder %v599_v1, 0 }
  0xa8   : > { %v497_v4 = vsel %vm496_vm0, %v495_v61, 0  ;;  %v601_v7 = vsel %vm600_vm1, %v599_v1, 0  ;;  %vm288_vm6 = vcmp.gt.s32.totalorder %v1550_v12, 0 }
  0xa9   : > { %v498_v5 = vshrl.u32 %v497_v4, 5  ;;  %v499_v6 = vand.u32 31, %v497_v4  ;;  %v1553_v16 = vshrl.u32 %v601_v7, 5  ;;  %v603_v17 = vand.u32 31, %v601_v7 }
  0xab   : > { %v500_v13 = vsub.s32 32, %v499_v6  ;;  %v502_v15 = vshll.u32 %v1438_v14, %v499_v6  ;;  %v505_v19 = vshll.u32 %v1439_v18, %v499_v6  ;;  %v508_v21 = vshll.u32 %v1440_v20, %v499_v6 }
  0xac   : > { %v511_v23 = vshll.u32 %v1441_v22, %v499_v6  ;;  %v514_v25 = vshll.u32 %v1442_v24, %v499_v6  ;;  %vm517_vm2 = vcmp.lt.s32.totalorder %v498_v5, 1  ;;  %vm518_vm3 = vcmp.lt.s32.totalorder %v498_v5, 2 }
  0xad   : > { %v503_v26 = vshrl.u32 %v1439_v18, %v500_v13  ;;  %v506_v27 = vshrl.u32 %v1440_v20, %v500_v13  ;;  %v509_v28 = vshrl.u32 %v1441_v22, %v500_v13  ;;  %v501_v29 = vshrl.u32 %v1438_v14, %v500_v13 }
  0xae   : > { %v512_v30 = vshrl.u32 %v1442_v24, %v500_v13  ;;  %v515_v32 = vshrl.u32 %v1443_v31, %v500_v13  ;;  %v604_v36 = vsub.s32 32, %v603_v17  ;;  %vm519_vm4 = vcmp.lt.s32.totalorder %v498_v5, 3 }
  0xaf   : > { %v504_v33 = vor.u32 %v503_v26, %v502_v15  ;;  %v507_v34 = vor.u32 %v506_v27, %v505_v19  ;;  %v510_v35 = vor.u32 %v509_v28, %v508_v21  ;;  %vm520_vm5 = vcmp.lt.s32.totalorder %v498_v5, 4 }
  0xb0   : > { %v513_v37 = vor.u32 %v512_v30, %v511_v23  ;;  %v516_v38 = vor.u32 %v515_v32, %v514_v25  ;;  %v606_v51 = vshll.u32 %v1438_v14, %v603_v17  ;;  %v607_v54 = vshrl.u32 %v1439_v18, %v604_v36 }
  0xb1   : > { %v521_v39 = vsel %vm517_vm2, %v501_v29, %v504_v33  ;;  %v522_v40 = vsel %vm520_vm5, %v510_v35, 2102212464  ;;  %v525_v41 = vsel %vm517_vm2, %v504_v33, %v507_v34  ;;  %v529_v42 = vsel %vm517_vm2, %v507_v34, %v510_v35 }
  0xb2   : > { %v523_v43 = vsel %vm519_vm4, %v507_v34, %v522_v40  ;;  %v526_v48 = vsel %vm520_vm5, %v513_v37, 920167782  ;;  %v530_v50 = vsel %vm520_vm5, %v516_v38, 1326507024  ;;  %v609_v55 = vshll.u32 %v1439_v18, %v603_v17 }
  0xb3   : > { %v527_v52 = vsel %vm519_vm4, %v510_v35, %v526_v48  ;;  %v531_v53 = vsel %vm519_vm4, %v513_v37, %v530_v50  ;;  %v524_v56 = vsel %vm518_vm3, %v521_v39, %v523_v43  ;;  %v610_v59 = vshrl.u32 %v1440_v20, %v604_v36 }
  0xb4   : > { %v528_v57 = vsel %vm518_vm3, %v525_v41, %v527_v52  ;;  %v532_v58 = vsel %vm518_vm3, %v529_v42, %v531_v53  ;;  %v608_v0 = vor.u32 %v607_v54, %v606_v51  ;;  %v612_v2 = vshll.u32 %v1440_v20, %v603_v17 }
  0xb5   : > { %v1577_v60 = vmul.u32.u64.low %v1545_v9, %v532_v58  ;;  %v1578_v61 = vmul.u32.u64.high %v1545_v9, %v532_v58, %v1577_v60  ;;  %v1581_v62 = vmul.u32.u64.low %v1545_v9, %v528_v57  ;;  %v1582_v63 = vmul.u32.u64.high %v1545_v9, %v528_v57, %v1581_v62 }
  0xb6   : > { %v611_v1 = vor.u32 %v610_v59, %v609_v55  ;;  %v613_v3 = vshrl.u32 %v1441_v22, %v604_v36  ;;  %v605_v4 = vshrl.u32 %v1438_v14, %v604_v36  ;;  %v615_v5 = vshll.u32 %v1441_v22, %v603_v17 }
  0xb7   : > { %v616_v6 = vshrl.u32 %v1442_v24, %v604_v36  ;;  %v619_v7 = vshrl.u32 %v1443_v31, %v604_v36  ;;  %v540_v13 = vmul.u32 %v1545_v9, %v524_v56  ;;  %v618_v19 = vshll.u32 %v1442_v24, %v603_v17 }
  0xb8   : > { %v614_v15 = vor.u32 %v613_v3, %v612_v2  ;;  %vm621_vm7 = vcmp.lt.s32.totalorder %v1553_v16, 1  ;;  %vm542_vm8 = vc.u32 %v1578_v61, %v1581_v62  ;;  %v543_v21 = vadd.s32 1, %v1582_v63 }
  0xb9   : > { %v617_v23 = vor.u32 %v616_v6, %v615_v5  ;;  %vm622_vm9 = vcmp.lt.s32.totalorder %v1553_v16, 2  ;;  %v620_v25 = vor.u32 %v619_v7, %v618_v19  ;;  %vm623_vm10 = vcmp.lt.s32.totalorder %v1553_v16, 3 }
  0xba   : > { %vm624_vm11 = vcmp.lt.s32.totalorder %v1553_v16, 4  ;;  %v629_v26 = vsel %vm621_vm7, %v608_v0, %v611_v1  ;;  %v544_v9 = vsel %vm542_vm8, %v543_v21, %v1582_v63  ;;  %v633_v28 = vsel %vm621_vm7, %v611_v1, %v614_v15 }
  0xbb   : > { %v626_v27 = vsel %vm624_vm11, %v614_v15, 2102212464  ;;  %v630_v17 = vsel %vm624_vm11, %v617_v23, 920167782  ;;  %v545_v29 = vadd.s32 %v544_v9, %v540_v13  ;;  %v625_v30 = vsel %vm621_vm7, %v605_v4, %v608_v0 }
  0xbc   : > { %v631_v32 = vsel %vm623_vm10, %v614_v15, %v630_v17  ;;  %v634_v33 = vsel %vm624_vm11, %v620_v25, 1326507024  ;;  %v627_v34 = vsel %vm623_vm10, %v611_v1, %v626_v27  ;;  %v289_v37 = vsel %vm288_vm6, %v1550_v12, 0 }
  0xbd   : > { %v632_v35 = vsel %vm622_vm9, %v629_v26, %v631_v32  ;;  %v635_v36 = vsel %vm623_vm10, %v617_v23, %v634_v33  ;;  %v546_v38 = vadd.s32 536870912, %v545_v29  ;;  %v628_v50 = vsel %vm622_vm9, %v625_v30, %v627_v34 }
  0xbe   : > { %v636_v39 = vsel %vm622_vm9, %v633_v28, %v635_v36  ;;  %v1609_v40 = vmul.u32.u64.low %v1547_v10, %v632_v35  ;;  %v1610_v41 = vmul.u32.u64.high %v1547_v10, %v632_v35, %v1609_v40  ;;  %v284_v12 = vand.u32 8388607, %v277_v11 }
  0xbf   : > { %v1614_v42 = vmul.u32.u64.low %v1547_v10, %v636_v39  ;;  %v1615_v43 = vmul.u32.u64.high %v1547_v10, %v636_v39, %v1614_v42  ;;  %v547_v48 = vshrl.u32 %v546_v38, 30  ;;  %v291_v51 = vand.u32 31, %v289_v37 }
  0xc0   : > { %v384_v52 = vand.u32 2139095040, %v1543_v8  ;;  %v647_v54 = vadd.s32 1, %v1610_v41  ;;  %v644_v55 = vmul.u32 %v1547_v10, %v628_v50  ;;  %v285_v58 = vor.u32 8388608, %v284_v12 }
  0xc1   : > { %v548_v53 = vshll.u32 %v547_v48, 30  ;;  %vm646_vm12 = vc.u32 %v1615_v43, %v1609_v40  ;;  %v292_v59 = vsub.s32 32, %v291_v51  ;;  %v1627_v0 = vshrl.u32 %v289_v37, 5 }
  0xc2   : > { %v648_v57 = vsel %vm646_vm12, %v647_v54, %v1610_v41  ;;  %v385_v60 = vshrl.u32 %v384_v52, 23  ;;  %v1630_v3 = vshll.u32 %v285_v58, 8  ;;  %v381_v10 = vand.u32 2147483647, %v1543_v8 }
  0xc3   : > { %v549_v56 = vsub.s32 %v545_v29, %v548_v53  ;;  %v649_v16 = vadd.s32 %v648_v57, %v644_v55  ;;  %v541_v4 = vadd.s32 %v1581_v62, %v1578_v61  ;;  %v301_v6 = vshrl.u32 %v1441_v22, %v292_v59 }
  0xc4   : > { %v1220_v7 = vadd.s32 4294967169, %v385_v60  ;;  %v295_v19 = vshrl.u32 %v1439_v18, %v292_v59  ;;  %v298_v21 = vshrl.u32 %v1440_v20, %v292_v59  ;;  %vm309_vm15 = vcmp.lt.s32.totalorder %v1627_v0, 1 }
  0xc5   : > { %v551_v63 = vsub.s32 0, %v549_v56  ;;  %v650_v1 = vadd.s32 536870912, %v649_v16  ;;  %v571_v23 = vsub.s32 4, %v547_v48  ;;  %v300_v62 = vshll.u32 %v1440_v20, %v291_v51 }
  0xc6   : > { %v304_v25 = vshrl.u32 %v1442_v24, %v292_v59  ;;  %v294_v47 = vshll.u32 %v1438_v14, %v291_v51  ;;  %v297_v9 = vshll.u32 %v1439_v18, %v291_v51  ;;  %v303_v27 = vshll.u32 %v1441_v22, %v291_v51 }
  0xc7   : > { %v1225_v2 = vmin.u32 %v551_v63, %v549_v56  ;;  %v1635_v5 = vshrl.u32 %v650_v1, 30  ;;  %vm310_vm0 = vcmp.lt.s32.totalorder %v1627_v0, 2  ;;  %v302_v28 = vor.u32 %v301_v6, %v300_v62 }
  0xc8   : > { %v307_v29 = vshrl.u32 %v1443_v31, %v292_v59  ;;  %vm311_vm1 = vcmp.lt.s32.totalorder %v1627_v0, 3  ;;  %v296_v30 = vor.u32 %v295_v19, %v294_v47  ;;  %v299_v32 = vor.u32 %v298_v21, %v297_v9 }
  0xc9   : > { %v553_v15 = vclz %v1225_v2  ;;  %v652_v61 = vshll.u32 %v1635_v5, 30  ;;  %v305_v33 = vor.u32 %v304_v25, %v303_v27  ;;  %v306_v36 = vshll.u32 %v1442_v24, %v291_v51 }
  0xca   : > { %vm312_vm3 = vcmp.lt.s32.totalorder %v1627_v0, 4  ;;  %v572_v39 = vsel %vm487_vm13, %v571_v23, %v547_v48  ;;  %v293_v41 = vshrl.u32 %v1438_v14, %v292_v59  ;;  %v317_v51 = vsel %vm309_vm15, %v296_v30, %v299_v32 }
  0xcb   : > { %v1226_v26 = vadd.s32 4294967294, %v553_v15  ;;  %v1654_v17 = vsub.s32 %v649_v16, %v652_v61  ;;  %v308_v12 = vor.u32 %v307_v29, %v306_v36  ;;  %v314_v52 = vsel %vm312_vm3, %v302_v28, 2102212464 }
  0xcc   : > { %v318_v55 = vsel %vm312_vm3, %v305_v33, 920167782  ;;  %v574_v48 = vsel %vm1640_vm14, 0, %v572_v39  ;;  %v313_v58 = vsel %vm309_vm15, %v293_v41, %v296_v30  ;;  %v321_v63 = vsel %vm309_vm15, %v299_v32, %v302_v28 }
  0xcd   : > { %vm1227_vm2 = vcmp.lt.s32.totalorder %v1226_v26, 0  ;;  %v655_v35 = vsub.s32 0, %v1654_v17  ;;  %v319_v60 = vsel %vm311_vm1, %v302_v28, %v318_v55  ;;  %v315_v2 = vsel %vm311_vm1, %v299_v32, %v314_v52 }
  0xce   : > { %v556_v34 = vsel %vm1227_vm2, 0, %v1226_v26  ;;  %v391_v19 = vadd.s32 1, %v1220_v7  ;;  %vm591_vm4 = vcmp.lt.s32.totalorder %v1530_v45, 0  ;;  %v316_v7 = vsel %vm310_vm0, %v313_v58, %v315_v2 }
  0xcf   : > { %v557_v37 = vsub.s32 32, %v556_v34  ;;  %v561_v38 = vsub.s32 4294967266, %v556_v34  ;;  %v558_v42 = vshll.u32 %v549_v56, %v556_v34  ;;  %v1229_v50 = vmin.u32 %v655_v35, %v1654_v17 }
  0xd0   : > { %v645_v56 = vadd.s32 %v1609_v40, %v1615_v43  ;;  %v322_v40 = vsel %vm312_vm3, %v308_v12, 1326507024  ;;  %vm392_vm6 = vcmp.gt.s32.totalorder %v391_v19, 0  ;;  %v578_v29 = vadd.s32 3, %v574_v48 }
  0xd1   : > { %v559_v53 = vshrl.u32 %v541_v4, %v557_v37  ;;  %v562_v54 = vadd.s32 127, %v561_v38  ;;  %v657_v57 = vclz %v1229_v50  ;;  %v320_v4 = vsel %vm310_vm0, %v317_v51, %v319_v60 }
  0xd2   : > { %v323_v15 = vsel %vm311_vm1, %v305_v33, %v322_v40  ;;  %v1693_v23 = vmul.u32.u64.low %v1630_v3, %v320_v4  ;;  %v1694_v61 = vmul.u32.u64.high %v1630_v3, %v320_v4, %v1693_v23  ;;  %v675_v30 = vsub.s32 4, %v1635_v5 }
  0xd3   : > { %v560_v16 = vor.u32 %v559_v53, %v558_v42  ;;  %v563_v59 = vshll.u32 %v562_v54, 23  ;;  %v1230_v1 = vadd.s32 4294967294, %v657_v57  ;;  %v324_v21 = vsel %vm310_vm0, %v321_v63, %v323_v15 }
  0xd4   : > { %v1698_v26 = vmul.u32.u64.low %v1630_v3, %v324_v21  ;;  %v1699_v47 = vmul.u32.u64.high %v1630_v3, %v324_v21, %v1698_v26  ;;  %v393_v32 = vsel %vm392_vm6, %v391_v19, 0  ;;  %v335_v36 = vadd.s32 1, %v1694_v61 }
  0xd5   : > { %v564_v43 = vor.u32 4788187, %v563_v59  ;;  %v567_v6 = vcvt.s32.f32 %v560_v16  ;;  %vm1231_vm5 = vcmp.lt.s32.totalorder %v1230_v1, 0  ;;  %v332_v38 = vmul.u32 %v1630_v3, %v316_v7 }
  0xd6   : > { %v660_v25 = vsel %vm1231_vm5, 0, %v1230_v1  ;;  %vm334_vm7 = vc.u32 %v1699_v47, %v1693_v23  ;;  %v395_v0 = vand.u32 31, %v393_v32  ;;  %vm1711_vm8 = vcmp.le.f32.partialorder %v589_v49, 0.7853982 }
  0xd7   : > { %v565_v62 = vand.u32 2147483647, %v564_v43  ;;  %v661_v9 = vsub.s32 32, %v660_v25  ;;  %v665_v27 = vsub.s32 4294967266, %v660_v25  ;;  %v662_v33 = vshll.u32 %v1654_v17, %v660_v25 }
  0xd8   : > { %v336_v17 = vsel %vm334_vm7, %v335_v36, %v1694_v61  ;;  %v388_v3 = vand.u32 8388607, %v381_v10  ;;  %v396_v52 = vsub.s32 32, %v395_v0  ;;  %v1723_v49 = vand.u32 3, %v578_v29 }
  0xd9   : > { %v568_v28 = vmul.f32 %v567_v6, %v565_v62  ;;  %v663_v34 = vshrl.u32 %v645_v56, %v661_v9  ;;  %v666_v35 = vadd.s32 127, %v665_v27  ;;  %v337_v12 = vadd.s32 %v336_v17, %v332_v38 }
  0xda   : > { %v1725_v51 = vand.u32 3, %v574_v48  ;;  %v676_v55 = vsel %vm591_vm4, %v675_v30, %v1635_v5  ;;  %v399_v57 = vshrl.u32 %v1439_v18, %v396_v52  ;;  %v402_v59 = vshrl.u32 %v1440_v20, %v396_v52 }
  0xdb   : > { %v569_v37 = vxor.u32 2147483648, %v568_v28  ;;  %v664_v41 = vor.u32 %v663_v34, %v662_v33  ;;  %v667_v42 = vshll.u32 %v666_v35, 23  ;;  %v338_v56 = vadd.s32 536870912, %v337_v12 }
  0xdc   : > { %v1734_v60 = vshrl.u32 %v393_v32, 5  ;;  %v398_v48 = vshll.u32 %v1438_v14, %v395_v0  ;;  %v405_v63 = vshrl.u32 %v1441_v22, %v396_v52  ;;  %v401_v2 = vshll.u32 %v1439_v18, %v395_v0 }
  0xdd   : > { %v570_v50 = vsel %vm487_vm13, %v569_v37, %v568_v28  ;;  %v668_v54 = vor.u32 4788187, %v667_v42  ;;  %v671_v16 = vcvt.s32.f32 %v664_v41  ;;  %v1732_v13 = vshrl.u32 %v338_v56, 30 }
  0xde   : > { %v573_v53 = vsel %vm1640_vm14, %v1528_v44, %v570_v50  ;;  %v407_v5 = vshll.u32 %v1441_v22, %v395_v0  ;;  %v408_v4 = vshrl.u32 %v1442_v24, %v396_v52  ;;  %v400_v43 = vor.u32 %v399_v57, %v398_v48 }
  0xdf   : > { %1341 = vcosq.f32 %v573_v53  ;;  %v669_v58 = vand.u32 2147483647, %v668_v54  ;;  %v340_v40 = vshll.u32 %v1732_v13, 30  ;;  %v404_v6 = vshll.u32 %v1440_v20, %v395_v0 }
  0xe0   : > { %1343 = vsinq.f32 %v573_v53  ;;  %v411_v15 = vshrl.u32 %v1443_v31, %v396_v52  ;;  %v403_v21 = vor.u32 %v402_v59, %v401_v2  ;;  %v409_v61 = vor.u32 %v408_v4, %v407_v5 }
  0xe1   : > { %v672_v1 = vmul.f32 %v671_v16, %v669_v58  ;;  %v410_v62 = vshll.u32 %v1442_v24, %v395_v0  ;;  %v678_v25 = vsel %vm1711_vm8, 0, %v676_v55  ;;  %v1747_v18 = vsub.s32 %v337_v12, %v340_v40 }
  0xe2   : > { %v389_v22 = vor.u32 8388608, %v388_v3  ;;  %v406_v26 = vor.u32 %v405_v63, %v404_v6  ;;  %vm1001_vm9 = vcmp.eq.s32.totalorder %v1725_v51, 2  ;;  %v397_v20 = vshrl.u32 %v1438_v14, %v396_v52 }
  0xe3   : > { %v673_v19 = vxor.u32 2147483648, %v672_v1  ;;  %v412_v31 = vor.u32 %v411_v15, %v410_v62  ;;  %vm413_vm10 = vcmp.lt.s32.totalorder %v1734_v60, 1  ;;  %vm998_vm11 = vcmp.eq.s32.totalorder %v1725_v51, 0 }
  0xe4   : > { %v343_v27 = vsub.s32 0, %v1747_v18  ;;  %vm414_vm12 = vcmp.lt.s32.totalorder %v1734_v60, 2  ;;  %vm416_vm13 = vcmp.lt.s32.totalorder %v1734_v60, 4  ;;  %vm580_vm14 = vcmp.lt.s32.totalorder %v1723_v49, 2 }
  0xe5   : > { %v674_v9 = vsel %vm591_vm4, %v673_v19, %v672_v1  ;;  %vm997_vm15 = vcmp.lt.s32.totalorder %v1725_v51, 2  ;;  %vm415_vm0 = vcmp.lt.s32.totalorder %v1734_v60, 3  ;;  %v421_v14 = vsel %vm413_vm10, %v400_v43, %v403_v21 }
  0xe6   : > { %v677_v24 = vsel %vm1711_vm8, %v1530_v45, %v674_v9  ;;  %v422_v7 = vsel %vm416_vm13, %v409_v61, 920167782  ;;  %vm577_vm1 = vweird.f32 %v1528_v44  ;;  %v1217_v28 = vmin.u32 %v343_v27, %v1747_v18 }
  0xe7   : > { %1345 = vcosq.f32 %v677_v24  ;;  %v418_v29 = vsel %vm416_vm13, %v406_v26, 2102212464  ;;  %v423_v30 = vsel %vm415_vm0, %v406_v26, %v422_v7  ;;  %v425_v33 = vsel %vm413_vm10, %v403_v21, %v406_v26 }
  0xe8   : > { %1347 = vsinq.f32 %v677_v24  ;;  %v424_v32 = vsel %vm414_vm12, %v421_v14, %v423_v30  ;;  %v426_v34 = vsel %vm416_vm13, %v412_v31, 1326507024  ;;  %v429_v35 = vshll.u32 %v389_v22, 8 }
  0xe9   : > { %vm581_vm2 = vcmp.eq.s32.totalorder %v1723_v49, 0  ;;  %vm584_vm3 = vcmp.eq.s32.totalorder %v1723_v49, 2  ;;  %v345_v36 = vclz %v1217_v28  ;;  %v417_v37 = vsel %vm413_vm10, %v397_v20, %v400_v43 }
  0xea   : > { %v419_v0 = vsel %vm415_vm0, %v403_v21, %v418_v29  ;;  %v427_v39 = vsel %vm415_vm0, %v409_v61, %v426_v34  ;;  %v1783_v41 = vmul.u32.u64.low %v429_v35, %v424_v32  ;;  %v1784_v42 = vmul.u32.u64.high %v429_v35, %v424_v32, %v1783_v41 }
  0xeb   : > { %v682_v12 = vadd.s32 3, %v678_v25  ;;  %v1218_v3 = vadd.s32 4294967294, %v345_v36  ;;  %v428_v52 = vsel %vm414_vm12, %v425_v33, %v427_v39  ;;  %v1099_v54 = vand.u32 3, %v678_v25 }
  0xec   : > { %v1342_v38 = vpop.eup %1341  ;;  %v1791_v55 = vmul.u32.u64.low %v429_v35, %v428_v52  ;;  %v1792_v56 = vmul.u32.u64.high %v429_v35, %v428_v52, %v1791_v55  ;;  %v420_v16 = vsel %vm414_vm12, %v417_v37, %v419_v0  ;;  %v439_v1 = vadd.s32 1, %v1784_v42 }
  0xed   : > { %v1344_v17 = vpop.eup %1343  ;;  %v585_v50 = vxor.u32 2147483648, %v1342_v38  ;;  %vm1219_vm4 = vcmp.lt.s32.totalorder %v1218_v3, 0  ;;  %v333_v4 = vadd.s32 %v1693_v23, %v1699_v47  ;;  %v683_v15 = vand.u32 3, %v682_v12 }
  0xee   : > { %v582_v53 = vxor.u32 2147483648, %v1344_v17  ;;  %v348_v63 = vsel %vm1219_vm4, 0, %v1218_v3  ;;  %v436_v51 = vmul.u32 %v429_v35, %v420_v16  ;;  %vm438_vm5 = vc.u32 %v1792_v56, %v1783_v41 }
  0xef   : > { %v586_v57 = vsel %vm584_vm3, %v585_v50, %v1344_v17  ;;  %v1003_v58 = vsel %vm1001_vm9, %v585_v50, %v1344_v17  ;;  %v349_v60 = vsub.s32 32, %v348_v63  ;;  %v353_v6 = vsub.s32 4294967266, %v348_v63 }
  0xf0   : > { %v583_v59 = vsel %vm581_vm2, %v1342_v38, %v582_v53  ;;  %v1000_v48 = vsel %vm998_vm11, %v1342_v38, %v582_v53  ;;  %v350_v23 = vshll.u32 %v1747_v18, %v348_v63  ;;  %v440_v19 = vsel %vm438_vm5, %v439_v1, %v1784_v42 }
  0xf1   : > { %v587_v2 = vsel %vm580_vm14, %v583_v59, %v586_v57  ;;  %v1004_v5 = vsel %vm997_vm15, %v1000_v48, %v1003_v58  ;;  %v351_v49 = vshrl.u32 %v333_v4, %v349_v60  ;;  %v354_v47 = vadd.s32 127, %v353_v6 }
  0xf2   : > { %v588_v40 = vsel %vm577_vm1, nan, %v587_v2  ;;  %v1005_v43 = vsel %vm577_vm1, nan, %v1004_v5  ;;  %vm681_vm6 = vweird.f32 %v1530_v45  ;;  %vm1100_vm7 = vcmp.lt.s32.totalorder %v1099_v54, 2 }
  0xf3   : > { %695 = vst [vmem:[%s1815_s6 + $0x10] sm:$0xff] %v588_v40  ;;  %1111 = vst [vmem:[%s1815_s6 + $0x30] sm:$0xff] %v1005_v43  ;;  %v441_v21 = vadd.s32 %v440_v19, %v436_v51  ;;  %vm1101_vm8 = vcmp.eq.s32.totalorder %v1099_v54, 0  ;;  %v352_v25 = vor.u32 %v351_v49, %v350_v23  ;;  %v355_v22 = vshll.u32 %v354_v47, 23 }
  0xf4   : > { %v1346_v44 = vpop.eup %1345  ;;  %vm688_vm9 = vcmp.eq.s32.totalorder %v683_v15, 2  ;;  %vm1104_vm10 = vcmp.eq.s32.totalorder %v1099_v54, 2  ;;  %vm685_vm11 = vcmp.eq.s32.totalorder %v683_v15, 0  ;;  %vm684_vm12 = vcmp.lt.s32.totalorder %v683_v15, 2 }
  0xf5   : > { %v1348_v61 = vpop.eup %1347  ;;  %v689_v62 = vxor.u32 2147483648, %v1346_v44  ;;  %v442_v9 = vadd.s32 536870912, %v441_v21  ;;  %v356_v31 = vor.u32 4788187, %v355_v22  ;;  %v359_v30 = vcvt.s32.f32 %v352_v25 }
  0xf6   : > { %v686_v26 = vxor.u32 2147483648, %v1348_v61  ;;  %v363_v38 = vsub.s32 4, %v1732_v13  ;;  %vm279_vm13 = vcmp.lt.s32.totalorder %v1532_v46, 0  ;;  %vm278_vm14 = vcmp.le.f32.partialorder %v277_v11, 0.7853982 }
  0xf7   : > { %v690_v18 = vsel %vm688_vm9, %v689_v62, %v1348_v61  ;;  %v1106_v20 = vsel %vm1104_vm10, %v689_v62, %v1348_v61  ;;  %v1824_v14 = vshrl.u32 %v442_v9, 30  ;;  %v357_v29 = vand.u32 2147483647, %v356_v31 }
  0xf8   : > { %v687_v24 = vsel %vm685_vm11, %v1346_v44, %v686_v26  ;;  %v1103_v27 = vsel %vm1101_vm8, %v1346_v44, %v686_v26  ;;  %v364_v17 = vsel %vm279_vm13, %v363_v38, %v1732_v13  ;;  %v437_v54 = vadd.s32 %v1783_v41, %v1792_v56 }
  0xf9   : > { %v691_v7 = vsel %vm684_vm12, %v687_v24, %v690_v18  ;;  %v1107_v28 = vsel %vm1100_vm7, %v1103_v27, %v1106_v20  ;;  %v444_v34 = vshll.u32 %v1824_v14, 30  ;;  %v360_v35 = vmul.f32 %v359_v30, %v357_v29 }
  0xfa   : > { %v692_v32 = vsel %vm681_vm6, nan, %v691_v7  ;;  %v1108_v33 = vsel %vm681_vm6, nan, %v1107_v28  ;;  %v366_v12 = vsel %vm278_vm14, 0, %v364_v17  ;;  %vm369_vm6 = vweird.f32 %v1532_v46 }
  0xfb   : > { %696 = vst [vmem:[%s1815_s6 + $0x18] sm:$0xff] %v692_v32  ;;  %1112 = vst [vmem:[%s1815_s6 + $0x38] sm:$0xff] %v1108_v33  ;;  %v445_v36 = vsub.s32 %v441_v21, %v444_v34  ;;  %v361_v37 = vxor.u32 2147483648, %v360_v35  ;;  %v370_v52 = vadd.s32 3, %v366_v12  ;;  %v790_v13 = vand.u32 3, %v366_v12 }
  0xfc   : > { %vm383_vm7 = vcmp.lt.s32.totalorder %v1543_v8, 0  ;;  %v467_v21 = vsub.s32 4, %v1824_v14  ;;  %vm382_vm8 = vcmp.le.f32.partialorder %v381_v10, 0.7853982 }
  0xfd   : > { %v447_v0 = vsub.s32 0, %v445_v36  ;;  %v362_v39 = vsel %vm279_vm13, %v361_v37, %v360_v35  ;;  %v371_v59 = vand.u32 3, %v370_v52  ;;  %vm795_vm2 = vcmp.eq.s32.totalorder %v790_v13, 2 }
  0xfe   : > { %v365_v42 = vsel %vm278_vm14, %v1532_v46, %v362_v39  ;;  %vm792_vm4 = vcmp.eq.s32.totalorder %v790_v13, 0  ;;  %vm791_vm5 = vcmp.lt.s32.totalorder %v790_v13, 2  ;;  %v468_v62 = vsel %vm383_vm7, %v467_v21, %v1824_v14 }
  0xff   : > { %v1221_v45 = vmin.u32 %v447_v0, %v445_v36  ;;  %1349 = vcosq.f32 %v365_v42  ;;  %vm372_vm0 = vcmp.lt.s32.totalorder %v371_v59, 2  ;;  %vm376_vm1 = vcmp.eq.s32.totalorder %v371_v59, 2 }
 0x100   : > { %1351 = vsinq.f32 %v365_v42  ;;  %vm373_vm3 = vcmp.eq.s32.totalorder %v371_v59, 0  ;;  %v470_v25 = vsel %vm382_vm8, 0, %v468_v62 }
 0x101   : > { %v449_v50 = vclz %v1221_v45  ;;  %v474_v22 = vadd.s32 3, %v470_v25  ;;  %v893_v9 = vand.u32 3, %v470_v25 }
 0x103   : > { %v1222_v3 = vadd.s32 4294967294, %v449_v50  ;;  %v475_v26 = vand.u32 3, %v474_v22  ;;  %vm898_vm10 = vcmp.eq.s32.totalorder %v893_v9, 2  ;;  %vm895_vm12 = vcmp.eq.s32.totalorder %v893_v9, 0 }
 0x104   : > { %vm894_vm14 = vcmp.lt.s32.totalorder %v893_v9, 2 }
 0x105   : > { %vm1223_vm15 = vcmp.lt.s32.totalorder %v1222_v3, 0  ;;  %vm480_vm9 = vcmp.eq.s32.totalorder %v475_v26, 2  ;;  %vm477_vm11 = vcmp.eq.s32.totalorder %v475_v26, 0  ;;  %vm476_vm13 = vcmp.lt.s32.totalorder %v475_v26, 2 }
 0x106   : > { %v452_v53 = vsel %vm1223_vm15, 0, %v1222_v3  ;;  %vm473_vm15 = vweird.f32 %v1543_v8 }
 0x107   : > { %v453_v55 = vsub.s32 32, %v452_v53  ;;  %v457_v57 = vsub.s32 4294967266, %v452_v53  ;;  %v454_v11 = vshll.u32 %v445_v36, %v452_v53 }
 0x109   : > { %v455_v58 = vshrl.u32 %v437_v54, %v453_v55  ;;  %v458_v16 = vadd.s32 127, %v457_v57 }
 0x10b   : > { %v456_v48 = vor.u32 %v455_v58, %v454_v11  ;;  %v459_v63 = vshll.u32 %v458_v16, 23 }
 0x10c   : > { %v1350_v1 = vpop.eup %1349 }
 0x10d   : > { %v460_v2 = vor.u32 4788187, %v459_v63  ;;  %v1352_v5 = vpop.eup %1351  ;;  %v377_v4 = vxor.u32 2147483648, %v1350_v1  ;;  %v463_v43 = vcvt.s32.f32 %v456_v48 }
 0x10e   : > { %v374_v60 = vxor.u32 2147483648, %v1352_v5 }
 0x10f   : > { %v461_v40 = vand.u32 2147483647, %v460_v2  ;;  %v378_v41 = vsel %vm376_vm1, %v377_v4, %v1352_v5  ;;  %v797_v56 = vsel %vm795_vm2, %v377_v4, %v1352_v5 }
 0x110   : > { %v375_v6 = vsel %vm373_vm3, %v1350_v1, %v374_v60  ;;  %v794_v49 = vsel %vm792_vm4, %v1350_v1, %v374_v60 }
 0x111   : > { %v464_v15 = vmul.f32 %v463_v43, %v461_v40  ;;  %v379_v51 = vsel %vm372_vm0, %v375_v6, %v378_v41  ;;  %v798_v23 = vsel %vm791_vm5, %v794_v49, %v797_v56 }
 0x112   : > { %v380_v47 = vsel %vm369_vm6, nan, %v379_v51  ;;  %v799_v44 = vsel %vm369_vm6, nan, %v798_v23 }
 0x113   : > { %v465_v19 = vxor.u32 2147483648, %v464_v15  ;;  %693 = vst [vmem:[%s1815_s6] sm:$0xff] %v380_v47  ;;  %1109 = vst [vmem:[%s1815_s6 + $0x20] sm:$0xff] %v799_v44 }
 0x115   : > { %v466_v61 = vsel %vm383_vm7, %v465_v19, %v464_v15 }
 0x116   : > { %v469_v46 = vsel %vm382_vm8, %v1543_v8, %v466_v61 }
 0x117   : > { %1353 = vcosq.f32 %v469_v46 }
 0x118   : > { %1355 = vsinq.f32 %v469_v46 }
 0x124   : > { %v1354_v18 = vpop.eup %1353 }
 0x125   : > { %v1356_v20 = vpop.eup %1355  ;;  %v481_v31 = vxor.u32 2147483648, %v1354_v18 }
 0x126   : > { %v478_v24 = vxor.u32 2147483648, %v1356_v20 }
 0x127   : > { %v482_v10 = vsel %vm480_vm9, %v481_v31, %v1356_v20  ;;  %v900_v27 = vsel %vm898_vm10, %v481_v31, %v1356_v20 }
 0x128   : > { %v479_v14 = vsel %vm477_vm11, %v1354_v18, %v478_v24  ;;  %v897_v7 = vsel %vm895_vm12, %v1354_v18, %v478_v24 }
 0x129   : > { %v483_v28 = vsel %vm476_vm13, %v479_v14, %v482_v10  ;;  %v901_v29 = vsel %vm894_vm14, %v897_v7, %v900_v27 }
 0x12a   : > { %v484_v30 = vsel %vm473_vm15, nan, %v483_v28  ;;  %v902_v32 = vsel %vm473_vm15, nan, %v901_v29 }
 0x12b   : > { %694 = vst [vmem:[%s1815_s6 + $0x8] sm:$0xff] %v484_v30  ;;  %1110 = vst [vmem:[%s1815_s6 + $0x28] sm:$0xff] %v902_v32 }
 0x12c   : > { %1370 = shalt.err (!%p1367_p5)
}
 0x12d   : > { %s1371_s26 = scalar_lea.hbm %s1857_s12, 1024  ;;  %s1375_s29 = scalar_lea.hbm %s1913_s2, 2048 }
 0x12e   : > { %p1372_p6 = scmp.ne.s32.totalorder %s1857_s12, %s1371_s26  ;;  %p1376_p10 = scmp.lt.s32.totalorder %s1857_s12, %s1913_s2 }
 0x12f   : > { %p1377_p11 = scmp.lt.s32.totalorder %s1375_s29, %s1371_s26 }
 0x130   : > { %p1373_p7 = pnand %p1372_p6, %p1502_p4 }
 0x131   : > { %p1378_p12 = por %p1377_p11, %p1376_p10 }
 0x132   : > { %p1374_p9 = pneg %p1373_p7 }
 0x134   : > { %p1379_p13 = pnand %p1378_p12, %p1374_p9 }
 0x136   : > { %1382 = shalt.err (!%p1379_p13)
}
 0x137   : > { %s1445_s4 = smov 256   ;;  %s1446_s5 = smov 16  }
 0x138   : > { %1271 = dma.vmem_to_hbm [thread:$0]  (%p1502_p4), %s1859_s8, 1024, %s1857_s12, %s1866_s18, %s1445_s4, %s1445_s4, %s1446_s5  }
 0x139 PF: > { %p1277_p0 = scmp.ge.s32.totalorder %s1433_s14, 2  ;;  %s1144_s6 = sand.u32 1, %s1413_s9  }
 0x13a   : > { %s1145_s7 = scalar_lea.sflag [#allocation3], %s1144_s6 }
 0x13b   : > { %p1274_p1 = pnand %p1277_p0, %p1509_p8 }
 0x13d   : > { %p1275_p2 = pneg %p1274_p1 }
 0x13f   : > { %1408 = dma.done.wait (%p1275_p2), %s1145_s7, 1024  }
 0x140   : > { %1410 = vsyncadd (%p1275_p2), %s1145_s7, 4294966272  ;;  %s15_s14 = sadd.s32 1, %s1433_s14   ;;  %s1920_s9 = smov %s1417_s10 }
 0x141   : > { %p12_p3 = scmp.ge.s32.totalorder %s15_s14, 4   ;;  %s1921_s10 = smov %s1421_s11 }
 0x142   : > { %s1922_s11 = smov %s1515_s22  ;;  %s1923_s12 = smov %s1429_s13 }
 0x143   : > { %s1924_s13 = smov %s1926_s17  ;;  %14 = sbr.rel (!%p12_p3) target bundleno = 4 (0x4), region = 63 }
 0x148   :  { %1150 = vsyncpa [#allocation3], 1 }
 0x149   :  { %1152 = vsyncpa [#allocation3 + $0x1], 1 }

</bundles_post_ra>
